<compile_context>
chip_gen: v7x
topology: tpu7x:2x2x1
jax: 0.10.0
libtpu: 0.0.40
codegen_flags: <defaults>
</compile_context>

<pallas_src>
import functools

import jax
import jax.numpy as jnp
from jax.experimental import pallas as pl
from jax.experimental.pallas import tpu as pltpu


def _round_up(x, m):
    return (x + m - 1) // m * m


def _pick_row_tile(m, cap=512):
    """Pick the row (second-minor) tile size for an (m, ...) operand.

    Prefers the largest multiple-of-16 divisor of m that is <= cap (no pad
    copy, bf16 sublane friendly).  For small m the whole (8-rounded) extent is
    one block, which the full-dim rule always allows.
    """
    if m <= cap:
        return _round_up(m, 8)
    for t in range(cap - cap % 16, 15, -16):
        if m % t == 0:
            return t
    return cap  # fall back: pad m up to a multiple of cap


# ---------------------------------------------------------------------------
# Pallas kernel 1: GEMM with fused BatchNorm affine (+ optional residual, ReLU).
# One K step per block (full-K tiles), bf16 operands, f32 accumulation/epilogue.
# ---------------------------------------------------------------------------
def _mm_bn_kernel(a_ref, b_ref, s_ref, c_ref, o_ref, *, relu):
    acc = jnp.dot(a_ref[...], b_ref[...], preferred_element_type=jnp.float32)
    y = acc * s_ref[...] + c_ref[...]
    if relu:
        y = jnp.maximum(y, 0.0)
    o_ref[...] = y.astype(o_ref.dtype)


def _mm_bn_res_kernel(a_ref, b_ref, s_ref, c_ref, r_ref, o_ref, *, relu):
    acc = jnp.dot(a_ref[...], b_ref[...], preferred_element_type=jnp.float32)
    y = acc * s_ref[...] + c_ref[...] + r_ref[...].astype(jnp.float32)
    if relu:
        y = jnp.maximum(y, 0.0)
    o_ref[...] = y.astype(o_ref.dtype)


@functools.lru_cache(maxsize=None)
def _build_matmul(mp, k, n, tm, tn, relu, has_res, out_dtype_name):
    out_dtype = jnp.dtype(out_dtype_name)
    grid = (mp // tm, n // tn)
    in_specs = [
        pl.BlockSpec((tm, k), lambda i, j: (i, 0)),    # A: full-K row panel
        pl.BlockSpec((k, tn), lambda i, j: (0, j)),    # B: full-K column panel
        pl.BlockSpec((1, tn), lambda i, j: (0, j)),    # BN scale
        pl.BlockSpec((1, tn), lambda i, j: (0, j)),    # BN bias
    ]
    if has_res:
        in_specs.append(pl.BlockSpec((tm, tn), lambda i, j: (i, j)))  # residual
        kernel = functools.partial(_mm_bn_res_kernel, relu=relu)
    else:
        kernel = functools.partial(_mm_bn_kernel, relu=relu)
    return pl.pallas_call(
        kernel,
        out_shape=jax.ShapeDtypeStruct((mp, n), out_dtype),
        grid=grid,
        in_specs=in_specs,
        out_specs=pl.BlockSpec((tm, tn), lambda i, j: (i, j)),
        compiler_params=pltpu.CompilerParams(
            dimension_semantics=("parallel", "parallel"),
            vmem_limit_bytes=48 * 1024 * 1024),
    )


def matmul_affine(a, b, scale, bias, relu, residual=None,
                  out_dtype=jnp.bfloat16):
    """out = maybe_relu((a @ b) * scale + bias [+ residual]); bf16 in, f32 acc."""
    m, k = a.shape
    _, n = b.shape
    tm = _pick_row_tile(m, 512)
    mp = _round_up(m, tm)
    tn = n if n <= 512 else 512          # all ResNet-50 Cout values divide this
    if mp != m:                           # only layer4 (M=98) actually pads
        a = jnp.pad(a, ((0, mp - m), (0, 0)))
        if residual is not None:
            residual = jnp.pad(residual, ((0, mp - m), (0, 0)))
    s = scale.astype(jnp.float32).reshape(1, n)
    c = bias.astype(jnp.float32).reshape(1, n)
    fn = _build_matmul(mp, k, n, tm, tn, bool(relu), residual is not None,
                       jnp.dtype(out_dtype).name)
    args = (a, b, s, c) if residual is None else (a, b, s, c, residual)
    out = fn(*args)
    return out if mp == m else out[:m]


# ---------------------------------------------------------------------------
# Convolution = (im2col for KH/KW>1) + Pallas GEMM with fused BN/ReLU/residual.
# ---------------------------------------------------------------------------
@functools.partial(jax.jit, static_argnames=("stride", "padding", "relu"))
def conv2d_bn_act(x, w, scale, bias, residual=None, *, stride, padding, relu):
    n, h, ww, cin = x.shape
    kh, kw, _, cout = w.shape
    ho = (h + 2 * padding - kh) // stride + 1
    wo = (ww + 2 * padding - kw) // stride + 1
    if kh == 1 and kw == 1 and padding == 0:
        xs = x if stride == 1 else x[:, ::stride, ::stride, :]
        a = xs.reshape(n * ho * wo, cin)
    else:
        # TODO(synk): direct conv (taps read in-kernel) would avoid this im2col.
        xp = jnp.pad(x, ((0, 0), (padding, padding), (padding, padding), (0, 0)))
        cols = [xp[:, i:i + stride * (ho - 1) + 1:stride,
                   j:j + stride * (wo - 1) + 1:stride, :]
                for i in range(kh) for j in range(kw)]
        a = jnp.concatenate(cols, axis=-1).reshape(n * ho * wo, kh * kw * cin)
    b = w.reshape(kh * kw * cin, cout)
    res = None if residual is None else residual.reshape(n * ho * wo, cout)
    out = matmul_affine(a, b, scale, bias, relu, residual=res)
    return out.reshape(n, ho, wo, cout)


# ---------------------------------------------------------------------------
# Pallas kernel 2: 3x3 stride-2 max pool (windows stacked in JAX, max in Pallas).
# ---------------------------------------------------------------------------
def _max_kernel(x_ref, o_ref):
    m = x_ref[0]
    for s in range(1, x_ref.shape[0]):
        m = jnp.maximum(m, x_ref[s])
    o_ref[...] = m


@functools.lru_cache(maxsize=None)
def _build_maxpool(k, rp, c, tr, dtype_name):
    return pl.pallas_call(
        _max_kernel,
        out_shape=jax.ShapeDtypeStruct((rp, c), jnp.dtype(dtype_name)),
        grid=(rp // tr,),
        in_specs=[pl.BlockSpec((k, tr, c), lambda i: (0, i, 0))],
        out_specs=pl.BlockSpec((tr, c), lambda i: (i, 0)),
        compiler_params=pltpu.CompilerParams(dimension_semantics=("parallel",)),
    )


@jax.jit
def maxpool_3x3_s2(x):
    ksize, stride, pad = 3, 2, 1
    n, h, w, c = x.shape
    ho = (h + 2 * pad - ksize) // stride + 1
    wo = (w + 2 * pad - ksize) // stride + 1
    xp = jnp.pad(x, ((0, 0), (pad, pad), (pad, pad), (0, 0)),
                 constant_values=-jnp.inf)
    slices = [xp[:, i:i + stride * (ho - 1) + 1:stride,
                 j:j + stride * (wo - 1) + 1:stride, :]
              for i in range(ksize) for j in range(ksize)]
    r = n * ho * wo
    tr = _pick_row_tile(r, 512)
    rp = _round_up(r, tr)
    stacked = jnp.stack(slices, axis=0).reshape(ksize * ksize, r, c)
    if rp != r:
        stacked = jnp.pad(stacked, ((0, 0), (0, rp - r), (0, 0)),
                          constant_values=-jnp.inf)
    out = _build_maxpool(ksize * ksize, rp, c, tr, x.dtype.name)(stacked)
    out = out if rp == r else out[:r]
    return out.reshape(n, ho, wo, c)


# ---------------------------------------------------------------------------
# Pallas kernel 3: AvgPool2d(kernel_size=7, stride=1) on a 7x7 map (global mean).
# ---------------------------------------------------------------------------
def _avgpool_kernel(x_ref, o_ref):
    o_ref[...] = jnp.mean(x_ref[...].astype(jnp.float32), axis=1, keepdims=True)


@jax.jit
def avgpool_7x7(x):
    n, h, w, c = x.shape
    assert h == 7 and w == 7, "AvgPool2d(kernel_size=7) expects a 7x7 feature map"
    out = pl.pallas_call(
        _avgpool_kernel,
        out_shape=jax.ShapeDtypeStruct((n, 1, c), jnp.float32),
    )(x.reshape(n, h * w, c))
    return out.reshape(n, 1, 1, c)


# ---------------------------------------------------------------------------
# Pallas kernel 4: 1x1-conv classifier + sigmoid.
# ---------------------------------------------------------------------------
def _fc_sigmoid_kernel(x_ref, w_ref, b_ref, o_ref):
    y = jnp.dot(x_ref[...], w_ref[...], preferred_element_type=jnp.float32)
    o_ref[...] = jax.nn.sigmoid(y + b_ref[...])


@jax.jit
def fc_sigmoid(x2d, w, b):
    r, cin = x2d.shape
    nc = w.shape[1]
    rp = _round_up(r, 8)
    ncp = _round_up(nc, 128)
    xp = jnp.pad(x2d, ((0, rp - r), (0, 0)))
    wp = jnp.pad(w, ((0, 0), (0, ncp - nc)))
    bp = jnp.pad(b, (0, ncp - nc)).reshape(1, ncp)
    out = pl.pallas_call(
        _fc_sigmoid_kernel,
        out_shape=jax.ShapeDtypeStruct((rp, ncp), jnp.float32),
    )(xp, wp, bp)
    return out[:r, :nc]


# ---------------------------------------------------------------------------
# Pallas kernel 5: MIL noisy-OR pooling over spatial positions.
# ---------------------------------------------------------------------------
def _mil_or_kernel(p_ref, o_ref):
    acc = 1.0 - p_ref[0]
    for s in range(1, p_ref.shape[0]):
        acc = acc * (1.0 - p_ref[s])
    o_ref[...] = 1.0 - acc


@jax.jit
def mil_noisy_or(p):
    n, ho, wo, c = p.shape
    cp = _round_up(c, 128)
    pp = jnp.pad(p, ((0, 0), (0, 0), (0, 0), (0, cp - c)))
    pp = pp.reshape(n, ho * wo, cp).transpose(1, 0, 2)   # (S, N, Cp)
    out = pl.pallas_call(
        _mil_or_kernel,
        out_shape=jax.ShapeDtypeStruct((n, cp), jnp.float32),
    )(pp)
    return out[:, :c]


# ---------------------------------------------------------------------------
# Parameter construction (deterministic, synthetic — no checkpoint load).
# ---------------------------------------------------------------------------
def _he_normal(key, shape):
    fan_in = shape[0] * shape[1] * shape[2]
    return (2.0 / fan_in) ** 0.5 * jax.random.normal(key, shape, jnp.float32)


def _make_bn_affine(key, c):
    kg, kb = jax.random.split(key)
    gamma = 1.0 + 0.1 * jax.random.normal(kg, (c,), jnp.float32)
    beta = 0.1 * jax.random.normal(kb, (c,), jnp.float32)
    running_mean = jnp.zeros((c,), jnp.float32)
    running_var = jnp.ones((c,), jnp.float32)
    eps = 1e-5
    scale = gamma / jnp.sqrt(running_var + eps)
    bias = beta - running_mean * scale
    return scale, bias


def _make_conv_bn(key, kh, kw, cin, cout):
    kw_, kb_ = jax.random.split(key)
    w = _he_normal(kw_, (kh, kw, cin, cout)).astype(jnp.bfloat16)
    scale, bias = _make_bn_affine(kb_, cout)
    return {"w": w, "scale": scale, "bias": bias}


def _make_bottleneck(key, cin, cmid, cout, stride):
    keys = jax.random.split(key, 4)
    blk = {
        "conv1": _make_conv_bn(keys[0], 1, 1, cin, cmid),
        "conv2": _make_conv_bn(keys[1], 3, 3, cmid, cmid),
        "conv3": _make_conv_bn(keys[2], 1, 1, cmid, cout),
    }
    if stride != 1 or cin != cout:
        blk["down"] = _make_conv_bn(keys[3], 1, 1, cin, cout)
    return blk


def make_params(key, num_classes):
    k_stem, k1, k2, k3, k4, k_fc = jax.random.split(key, 6)
    params = {"stem": _make_conv_bn(k_stem, 7, 7, 3, 64)}

    def make_layer(k, cin, cmid, cout, n_blocks, stride):
        ks = jax.random.split(k, n_blocks)
        return [
            _make_bottleneck(ks[i], cin if i == 0 else cout, cmid, cout,
                             stride if i == 0 else 1)
            for i in range(n_blocks)
        ]

    params["layer1"] = make_layer(k1, 64, 64, 256, 3, 1)
    params["layer2"] = make_layer(k2, 256, 128, 512, 4, 2)
    params["layer3"] = make_layer(k3, 512, 256, 1024, 6, 2)
    params["layer4"] = make_layer(k4, 1024, 512, 2048, 3, 2)
    # fc = nn.Conv2d(2048, num_classes, 1); _initialize_weights_FCN:
    # weight ~ N(0, 0.001), bias = -6.58
    kfw, _ = jax.random.split(k_fc)
    params["fc_w"] = 0.001 * jax.random.normal(kfw, (2048, num_classes), jnp.float32)
    params["fc_b"] = jnp.full((num_classes,), -6.58, jnp.float32)
    return params


# ---------------------------------------------------------------------------
# Forward pass (mirrors Resnet50_MIL.forward).
# ---------------------------------------------------------------------------
def _conv_bn(x, p, stride, padding, relu):
    return conv2d_bn_act(x, p["w"], p["scale"], p["bias"],
                         stride=stride, padding=padding, relu=relu)


def _bottleneck(x, blk, stride):
    out = _conv_bn(x, blk["conv1"], 1, 0, True)
    out = _conv_bn(out, blk["conv2"], stride, 1, True)
    identity = _conv_bn(x, blk["down"], stride, 0, False) if "down" in blk else x
    # conv3 + BN with the residual add + ReLU fused into the GEMM epilogue.
    return conv2d_bn_act(out, blk["conv3"]["w"], blk["conv3"]["scale"],
                         blk["conv3"]["bias"], residual=identity,
                         stride=1, padding=0, relu=True)


def resnet50_mil_forward(params, x_nchw):
    x = jnp.transpose(x_nchw, (0, 2, 3, 1)).astype(jnp.bfloat16)      # NCHW -> NHWC
    x = _conv_bn(x, params["stem"], stride=2, padding=3, relu=True)   # conv1+bn1+relu
    x = maxpool_3x3_s2(x)                                             # maxpool
    for layer_name, layer_stride in (("layer1", 1), ("layer2", 2),
                                     ("layer3", 2), ("layer4", 2)):
        for idx, blk in enumerate(params[layer_name]):
            x = _bottleneck(x, blk, layer_stride if idx == 0 else 1)
    x = avgpool_7x7(x)                                                # avgpool 7x7
    n, ho, wo, c = x.shape
    probs = fc_sigmoid(x.reshape(n * ho * wo, c),
                       params["fc_w"], params["fc_b"])                # fc + sigmoid
    probs = probs.reshape(n, ho, wo, -1)
    return mil_noisy_or(probs)                                        # MIL_or -> (N, num_classes)


if __name__ == "__main__":
    key = jax.random.PRNGKey(0)
    kp, kx = jax.random.split(key)
    num_classes = 20
    params = make_params(kp, num_classes)

    # Smallest spatial size compatible with the fixed AvgPool2d(kernel_size=7)
    # at the end of the ResNet-50 trunk (32x total downsampling) is 224x224.
    x = jax.random.normal(kx, (2, 3, 224, 224), jnp.float32)  # NCHW (PyTorch layout)

    out = resnet50_mil_forward(params, x)
    out = jax.block_until_ready(out)

    assert out.shape == (2, num_classes), out.shape
    assert bool(jnp.all(jnp.isfinite(out)))
    assert bool(jnp.all(out >= 0.0)) and bool(jnp.all(out <= 1.0))
    print("KERNEL_OK")
</pallas_src>

<mosaic_0001>
module attributes {stable_mosaic.version = 11 : i64} {
  func.func @_mm_bn_kernel(%arg0: i32, %arg1: i32, %arg2: memref<512x147xbf16, #tpu.memory_space<vmem>>, %arg3: memref<147x64xbf16, #tpu.memory_space<vmem>>, %arg4: memref<1x64xf32, #tpu.memory_space<vmem>>, %arg5: memref<1x64xf32, #tpu.memory_space<vmem>>, %arg6: memref<512x64xbf16, #tpu.memory_space<vmem>>) attributes {dimension_semantics = [#tpu.dimension_semantics<parallel>, #tpu.dimension_semantics<parallel>], iteration_bounds = array<i64: 49, 1>, scalar_prefetch = 0 : i64, scratch_operands = 0 : i64, tpu.core_type = #tpu.core_type<tc>, window_params = [{transform_indices = @transform_0, window_bounds = array<i64: 512, 147>}, {transform_indices = @transform_1, window_bounds = array<i64: 147, 64>}, {transform_indices = @transform_2, window_bounds = array<i64: 1, 64>}, {transform_indices = @transform_3, window_bounds = array<i64: 1, 64>}, {transform_indices = @transform_4, window_bounds = array<i64: 512, 64>}]} {
    %c0 = arith.constant 0 : index
    %c0_0 = arith.constant 0 : index
    %0 = vector.load %arg2[%c0, %c0_0] : memref<512x147xbf16, #tpu.memory_space<vmem>>, vector<512x147xbf16>
    %c0_1 = arith.constant 0 : index
    %c0_2 = arith.constant 0 : index
    %1 = vector.load %arg3[%c0_1, %c0_2] : memref<147x64xbf16, #tpu.memory_space<vmem>>, vector<147x64xbf16>
    %cst = arith.constant dense<0.000000e+00> : vector<512x64xf32>
    %2 = tpu.matmul %0, %1, %cst {dimension_numbers = #tpu.dot_dimension_numbers<[1], [0], [0], [1], [0, 0, 1, 1], [], []>} : vector<512x147xbf16>, vector<147x64xbf16>, vector<512x64xf32> -> vector<512x64xf32>
    %c0_3 = arith.constant 0 : index
    %c0_4 = arith.constant 0 : index
    %3 = vector.load %arg4[%c0_3, %c0_4] : memref<1x64xf32, #tpu.memory_space<vmem>>, vector<1x64xf32>
    %4 = vector.broadcast %3 : vector<1x64xf32> to vector<512x64xf32>
    %5 = arith.mulf %2, %4 : vector<512x64xf32>
    %c0_5 = arith.constant 0 : index
    %c0_6 = arith.constant 0 : index
    %6 = vector.load %arg5[%c0_5, %c0_6] : memref<1x64xf32, #tpu.memory_space<vmem>>, vector<1x64xf32>
    %7 = vector.broadcast %6 : vector<1x64xf32> to vector<512x64xf32>
    %8 = arith.addf %5, %7 : vector<512x64xf32>
    %cst_7 = arith.constant 0.000000e+00 : f32
    %9 = vector.broadcast %cst_7 : f32 to vector<512x64xf32>
    %10 = arith.maximumf %8, %9 : vector<512x64xf32>
    %11 = arith.truncf %10 : vector<512x64xf32> to vector<512x64xbf16>
    %c0_8 = arith.constant 0 : index
    %c0_9 = arith.constant 0 : index
    %12 = vector.load %arg6[%c0_8, %c0_9] : memref<512x64xbf16, #tpu.memory_space<vmem>>, vector<512x64xbf16>
    tpu.vector_store %arg6[%c0_8, %c0_9], %11 {strides = array<i32>} : memref<512x64xbf16, #tpu.memory_space<vmem>>, vector<512x64xbf16>,
    return
  }
  func.func @transform_0(%arg0: i32, %arg1: i32) -> (i32, i32) {
    %c0_i32 = arith.constant 0 : i32
    %c0_i32_0 = arith.constant 0 : i32
    return %arg0, %c0_i32 : i32, i32
  }
  func.func @transform_1(%arg0: i32, %arg1: i32) -> (i32, i32) {
    %c0_i32 = arith.constant 0 : i32
    %c0_i32_0 = arith.constant 0 : i32
    return %c0_i32, %arg1 : i32, i32
  }
  func.func @transform_2(%arg0: i32, %arg1: i32) -> (i32, i32) {
    %c0_i32 = arith.constant 0 : i32
    %c0_i32_0 = arith.constant 0 : i32
    return %c0_i32, %arg1 : i32, i32
  }
  func.func @transform_3(%arg0: i32, %arg1: i32) -> (i32, i32) {
    %c0_i32 = arith.constant 0 : i32
    %c0_i32_0 = arith.constant 0 : i32
    return %c0_i32, %arg1 : i32, i32
  }
  func.func @transform_4(%arg0: i32, %arg1: i32) -> (i32, i32) {
    %c0_i32 = arith.constant 0 : i32
    return %arg0, %arg1 : i32, i32
  }
}

</mosaic_0001>

<bundles_post_ra>
// kernel: conv2d_bn_act.1
= control target key start
LH: loop header
LB: loop body
LE: loop exit
PB: predicated region body
PF: predicated region fallthrough
CT: control target
= control target key end

     0   :  { %9 = vsyncpa [#allocation3], 0  ;;  %s2801_s0 = inlined_call_operand.vmem [shape: bf16[25088,147], index: 0, kind: input, shape index: {}]   ;;  %s2802_s1 = inlined_call_operand.vmem [shape: bf16[147,64], index: 1, kind: input, shape index: {}]   ;;  %s2803_s2 = inlined_call_operand.vmem [shape: f32[1,64], index: 2, kind: input, shape index: {}]   ;;  %s2804_s3 = inlined_call_operand.vmem [shape: f32[1,64], index: 3, kind: input, shape index: {}]   ;;  %s2805_s4 = inlined_call_operand.hbm [shape: bf16[25088,64], index: 4, kind: output, shape index: {}]  }
   0x1   :  { %11 = vsyncpa [#allocation3 + $0x1], 0  ;;  %s2286_s15 = smov 0   ;;  %s2288_s16 = smov 0  }
   0x2   :  { %s2290_s17 = smov 0   ;;  %s2292_s18 = smov 0  }
   0x3   :  { %s2294_s19 = smov 0   ;;  %s2296_s20 = smov 0  }
   0x4 LB: > { %s1736_s21 = sadd.s32 4294967295, %s2254_s20   ;;  %s1737_s22 = sadd.s32 4294967294, %s2254_s20   ;;  %s2254_s20 = sphi %s2296_s20, %s17_s20   ;;  %s2250_s19 = sphi %s2294_s19, %s2812_s19   ;;  %s2246_s18 = sphi %s2292_s18, %s2811_s18   ;;  %s2242_s17 = sphi %s2290_s17, %s2810_s17   ;;  %s2238_s16 = sphi %s2288_s16, %s2809_s16   ;;  %s2234_s15 = sphi %s2286_s15, %s2808_s15  }
   0x5   : > { %s29_s23 = sadd.s32 1, %s2250_s19  ;;  %s142_s24 = sadd.s32 1, %s2242_s17 }
   0x6   : > { %p31_p0 = scmp.ge.s32.totalorder %s29_s23, 49  ;;  %p152_p1 = scmp.ne.s32.totalorder %s2242_s17, %s2238_s16 }
   0x7   : > { %p153_p2 = scmp.eq.s32.totalorder %s1736_s21, 48  ;;  %p158_p3 = scmp.ne.s32.totalorder %s2238_s16, %s2234_s15 }
   0x8   : > { %s2814_s23 = smov (%p31_p0, %s29_s23), 0  ;;  %p159_p5 = scmp.eq.s32.totalorder %s1737_s22, 48 }
   0x9   : > { %p2326_p4 = por %p153_p2, %p152_p1  ;;  %s137_s26 = ssub.s32 %s2250_s19, %s2814_s23 }
   0xa   : > { %p1743_p6 = scmp.ge.s32.totalorder %s2254_s20, 1  ;;  %p140_p7 = scmp.eq.s32.totalorder %s137_s26, 0 }
   0xb   : > { %p2333_p8 = por %p159_p5, %p158_p3  ;;  %p206_p9 = scmp.lt.s32.totalorder %s2254_s20, 50 }
   0xc   : > { %s2339_s28 = scalar_select %p140_p7, %s2242_s17, %s142_s24  }
   0xd   : > { %p207_p10 = pnand %p1743_p6, %p206_p9 }
   0xe   : > { %v2070_v0 = vld [vmem:[%s2802_s1] sm:$0xff] (!%p207_p10)   ;;  %v2256_v1 = vmov (!%p207_p10), 0   ;;  %v2071_v2 = vld [vmem:[%s2802_s1 + $0x8] sm:$0xff] (!%p207_p10)   ;;  %v2072_v3 = vld [vmem:[%s2802_s1 + $0x10] sm:$0xff] (!%p207_p10)   ;;  %s1745_s9 = sshll.u32 (!%p207_p10), %s2246_s18, 6  ;;  %vm690_vm0 = vcmask (!%p207_p10), 154624  }
   0xf   : > { %210 = sbr.rel (%p207_p10) target bundleno = 412 (0x19c), region = 36  ;;  %794 = vmatprep.subr.bf16.mxu0 (!%p207_p10), %v2256_v1  ;;  %1991 = vmatprep.subr.bf16.mxu1 (!%p207_p10), %v2256_v1  ;;  %p244_p11 = scmp.lt.s32.totalorder (!%p207_p10), %s1745_s9, 3135  ;;  %v2073_v4 = vld [vmem:[%s2802_s1 + $0x18] sm:$0xff] (!%p207_p10)   ;;  %v2074_v5 = vld [vmem:[%s2802_s1 + $0x20] sm:$0xff] (!%p207_p10)   ;;  %v2075_v8 = vld [vmem:[%s2802_s1 + $0x28] sm:$0xff] (!%p207_p10)   ;;  %vm787_vm1 = vcmask (!%p207_p10), 1040384  }
  0x10   : > { %795 = vmatpush1.bf16.msra.mxu0 (!%p207_p10), %v2070_v0  ;;  %2001 = vmatpush1.bf16.msra.mxu1 (!%p207_p10), %v2070_v0  ;;  %v2076_v9 = vld [vmem:[%s2802_s1 + $0x30] sm:$0xff] (!%p207_p10)   ;;  %v2077_v10 = vld [vmem:[%s2802_s1 + $0x38] sm:$0xff] (!%p207_p10)   ;;  %vm788_vm2 = vcmask (!%p207_p10), 1041408   ;;  %v2257_v11 = vmov (!%p207_p10), 65535   ;;  %v2078_v13 = vld [vmem:[%s2802_s1 + $0x40] sm:$0xff] (!%p207_p10)   ;;  %s240_s14 = sand.u32 (!%p207_p10), 1, %s2238_s16  }
  0x11   : > { %796 = vmatprep.subr.bf16.mxu0 (!%p207_p10), %v2256_v1  ;;  %1992 = vmatprep.subr.bf16.mxu1 (!%p207_p10), %v2256_v1  ;;  %v789_v12 = vsel (!%p207_p10), %vm787_vm1, 4294967295, %v2257_v11  ;;  %v2079_v14 = vld [vmem:[%s2802_s1 + $0x48] ss:$0 sps:$4 sm:$0x33] (!%p207_p10)   ;;  %vm1545_vm3 = vcmask (!%p207_p10), 519168   ;;  %s1990_s29 = sshll.u32 (!%p207_p10), %s2246_s18, 12 }
  0x12   : > { %v790_v15 = vsel (!%p207_p10), %vm788_vm2, %v789_v12, 0  ;;  %s2741_s7 = scalar_lea.hbm (!%p207_p10), %s2805_s4, %s1990_s29  ;;  %s2755_s18 = scalar_lea.sflag (!%p207_p10), [#allocation3], %s240_s14 }
  0x13   : > { %v792_v16 = vand.u32 (!%p207_p10), %v2079_v14, %v790_v15  ;;  %v2476_v15 = vld [vmem:[%s2803_s2] ss:$0 sm:$0xff] (!%p207_p10) }
  0x14   : > { %797 = vmatpush1.bf16.msra.mxu0 (!%p207_p10), %v2071_v2  ;;  %2002 = vmatpush1.bf16.msra.mxu1 (!%p207_p10), %v2071_v2 }
  0x15   : > { %798 = vmatprep.subr.bf16.mxu0 (!%p207_p10), %v2256_v1  ;;  %1993 = vmatprep.subr.bf16.mxu1 (!%p207_p10), %v2256_v1 }
  0x16   : > { %s2816_s9 = smov (!%p244_p11, %s1745_s9), 3135 }
  0x17   : > { %s1925_s12 = sshll.u32 %s2816_s9, 3  ;;  %s2258_s9 = smov [#allocation2]  }
  0x18   : > { %799 = vmatpush1.bf16.msra.mxu0 %v2072_v3  ;;  %2003 = vmatpush1.bf16.msra.mxu1 %v2072_v3  ;;  %s2357_s21 = scalar_lea.vmem %s2801_s0, %s1925_s12  ;;  %s2180_s10 = sshll.u32 %s2258_s9, 4  ;;  %s2181_s10 = int_to_ptr.vmem [resolvable:$false] %s2180_s10 }
  0x19   : > { %800 = vmatprep.subr.bf16.mxu0 %v2256_v1  ;;  %1994 = vmatprep.subr.bf16.mxu1 %v2256_v1  ;;  %v2082_v6 = vld [vmem:[%s2357_s21 + $0x4] ss:$8 sps:$4 sm:$0xff]   ;;  %v2080_v17 = vld [vmem:[%s2357_s21] ss:$8 sps:$4 sm:$0xff]   ;;  %v2086_v19 = vld [vmem:[%s2357_s21 + $0x14] ss:$8 sps:$4 sm:$0xff]  }
  0x1a   : > { %v2085_v7 = vld [vmem:[%s2357_s21 + $0x104] ss:$8 sps:$4 sm:$0xff]   ;;  %1822 = vmatprep.mubr.msk.bf16.mxu0 %vm690_vm0, %v2082_v6  ;;  %v2083_v18 = vld [vmem:[%s2357_s21 + $0x100] ss:$8 sps:$4 sm:$0xff]   ;;  %v2088_v20 = vld [vmem:[%s2357_s21 + $0x114] ss:$8 sps:$4 sm:$0xff]  }
  0x1b   : > { %1838 = vmatprep.mubr.msk.bf16.mxu1 %vm690_vm0, %v2085_v7  ;;  %v2090_v21 = vld [vmem:[%s2357_s21 + $0x10] ss:$8 sps:$4 sm:$0xff]   ;;  %v2092_v23 = vld [vmem:[%s2357_s21 + $0x24] ss:$8 sps:$4 sm:$0xff]   ;;  %v2096_v25 = vld [vmem:[%s2357_s21 + $0x20] ss:$8 sps:$4 sm:$0xff]  }
  0x1c   : > { %801 = vmatpush1.bf16.msra.mxu0 %v2073_v4  ;;  %2004 = vmatpush1.bf16.msra.mxu1 %v2073_v4  ;;  %v2091_v22 = vld [vmem:[%s2357_s21 + $0x110] ss:$8 sps:$4 sm:$0xff]   ;;  %v2094_v24 = vld [vmem:[%s2357_s21 + $0x124] ss:$8 sps:$4 sm:$0xff]   ;;  %v2097_v26 = vld [vmem:[%s2357_s21 + $0x120] ss:$8 sps:$4 sm:$0xff]  }
  0x1d   : > { %802 = vmatprep.subr.bf16.mxu0 %v2256_v1  ;;  %1995 = vmatprep.subr.bf16.mxu1 %v2256_v1  ;;  %v2098_v27 = vld [vmem:[%s2357_s21 + $0x34] ss:$8 sps:$4 sm:$0xff]   ;;  %v2102_v29 = vld [vmem:[%s2357_s21 + $0x30] ss:$8 sps:$4 sm:$0xff]   ;;  %v2104_v31 = vld [vmem:[%s2357_s21 + $0x44] ss:$8 sps:$4 sm:$0xff]  }
  0x1e   : > { %v2100_v28 = vld [vmem:[%s2357_s21 + $0x134] ss:$8 sps:$4 sm:$0xff]   ;;  %v2103_v30 = vld [vmem:[%s2357_s21 + $0x130] ss:$8 sps:$4 sm:$0xff]   ;;  %v2106_v32 = vld [vmem:[%s2357_s21 + $0x144] ss:$8 sps:$4 sm:$0xff]  }
  0x1f   : > { %v2108_v33 = vld [vmem:[%s2357_s21 + $0x40] ss:$8 sps:$4 sm:$0xff]   ;;  %v2110_v35 = vld [vmem:[%s2357_s21 + $0x54] ss:$8 sps:$4 sm:$0xff]   ;;  %v2114_v37 = vld [vmem:[%s2357_s21 + $0x50] ss:$8 sps:$4 sm:$0xff]  }
  0x20   : > { %803 = vmatpush1.bf16.msra.mxu0 %v2074_v5  ;;  %2005 = vmatpush1.bf16.msra.mxu1 %v2074_v5  ;;  %v2109_v34 = vld [vmem:[%s2357_s21 + $0x140] ss:$8 sps:$4 sm:$0xff]   ;;  %v2112_v36 = vld [vmem:[%s2357_s21 + $0x154] ss:$8 sps:$4 sm:$0xff]   ;;  %v2115_v38 = vld [vmem:[%s2357_s21 + $0x150] ss:$8 sps:$4 sm:$0xff]  }
  0x21   : > { %804 = vmatprep.subr.bf16.mxu0 %v2256_v1  ;;  %1996 = vmatprep.subr.bf16.mxu1 %v2256_v1  ;;  %v2116_v39 = vld [vmem:[%s2357_s21 + $0x64] ss:$8 sps:$4 sm:$0xff]   ;;  %v2120_v41 = vld [vmem:[%s2357_s21 + $0x60] ss:$8 sps:$4 sm:$0xff]   ;;  %v2122_v43 = vld [vmem:[%s2357_s21 + $0x74] ss:$8 sps:$4 sm:$0xff]  }
  0x22   : > { %v2118_v40 = vld [vmem:[%s2357_s21 + $0x164] ss:$8 sps:$4 sm:$0xff]   ;;  %v2121_v42 = vld [vmem:[%s2357_s21 + $0x160] ss:$8 sps:$4 sm:$0xff]   ;;  %v2124_v44 = vld [vmem:[%s2357_s21 + $0x174] ss:$8 sps:$4 sm:$0xff]  }
  0x23   : > { %v2126_v45 = vld [vmem:[%s2357_s21 + $0x70] ss:$8 sps:$4 sm:$0xff]   ;;  %v2128_v47 = vld [vmem:[%s2357_s21 + $0x84] ss:$8 sps:$4 sm:$0xff]   ;;  %v2132_v49 = vld [vmem:[%s2357_s21 + $0x80] ss:$8 sps:$4 sm:$0xff]  }
  0x24   : > { %805 = vmatpush1.bf16.msra.mxu0 %v2075_v8  ;;  %2006 = vmatpush1.bf16.msra.mxu1 %v2075_v8  ;;  %v2127_v46 = vld [vmem:[%s2357_s21 + $0x170] ss:$8 sps:$4 sm:$0xff]   ;;  %v2130_v48 = vld [vmem:[%s2357_s21 + $0x184] ss:$8 sps:$4 sm:$0xff]   ;;  %v2133_v50 = vld [vmem:[%s2357_s21 + $0x180] ss:$8 sps:$4 sm:$0xff]  }
  0x25   : > { %806 = vmatprep.subr.bf16.mxu0 %v2256_v1  ;;  %1997 = vmatprep.subr.bf16.mxu1 %v2256_v1  ;;  %v2134_v51 = vld [vmem:[%s2357_s21 + $0x94] ss:$8 sps:$4 sm:$0xff]   ;;  %v2138_v53 = vld [vmem:[%s2357_s21 + $0x90] ss:$8 sps:$4 sm:$0xff]   ;;  %v2140_v55 = vld [vmem:[%s2357_s21 + $0xa4] ss:$8 sps:$4 sm:$0xff]  }
  0x26   : > { %v2136_v52 = vld [vmem:[%s2357_s21 + $0x194] ss:$8 sps:$4 sm:$0xff]   ;;  %v2139_v54 = vld [vmem:[%s2357_s21 + $0x190] ss:$8 sps:$4 sm:$0xff]   ;;  %v2142_v56 = vld [vmem:[%s2357_s21 + $0x1a4] ss:$8 sps:$4 sm:$0xff]  }
  0x27   : > { %v2144_v57 = vld [vmem:[%s2357_s21 + $0xa0] ss:$8 sps:$4 sm:$0xff]   ;;  %v2146_v59 = vld [vmem:[%s2357_s21 + $0xb4] ss:$8 sps:$4 sm:$0xff]   ;;  %v2150_v61 = vld [vmem:[%s2357_s21 + $0xb0] ss:$8 sps:$4 sm:$0xff]  }
  0x28   : > { %807 = vmatpush1.bf16.msra.mxu0 %v2076_v9  ;;  %2007 = vmatpush1.bf16.msra.mxu1 %v2076_v9  ;;  %v2145_v58 = vld [vmem:[%s2357_s21 + $0x1a0] ss:$8 sps:$4 sm:$0xff]   ;;  %v2148_v60 = vld [vmem:[%s2357_s21 + $0x1b4] ss:$8 sps:$4 sm:$0xff]   ;;  %v2151_v62 = vld [vmem:[%s2357_s21 + $0x1b0] ss:$8 sps:$4 sm:$0xff]  }
  0x29   : > { %808 = vmatprep.subr.bf16.mxu0 %v2256_v1  ;;  %1998 = vmatprep.subr.bf16.mxu1 %v2256_v1  ;;  %v2152_v63 = vld [vmem:[%s2357_s21 + $0xc4] ss:$8 sps:$4 sm:$0xff]   ;;  %v2157_v2 = vld [vmem:[%s2357_s21 + $0x1c0] ss:$8 sps:$4 sm:$0xff]   ;;  %v2158_v3 = vld [vmem:[%s2357_s21 + $0xd4] ss:$8 sps:$4 sm:$0xff]  }
  0x2a   : > { %v2154_v0 = vld [vmem:[%s2357_s21 + $0x1c4] ss:$8 sps:$4 sm:$0xff]   ;;  %v2160_v4 = vld [vmem:[%s2357_s21 + $0x1d4] ss:$8 sps:$4 sm:$0xff]   ;;  %v2162_v5 = vld [vmem:[%s2357_s21 + $0xd0] ss:$8 sps:$4 sm:$0xff]  }
  0x2b   : > { %v2163_v6 = vld [vmem:[%s2357_s21 + $0x1d0] ss:$8 sps:$4 sm:$0xff]   ;;  %v2164_v7 = vld [vmem:[%s2357_s21 + $0xe4] ss:$8 sps:$4 sm:$0xff]   ;;  %v2168_v9 = vld [vmem:[%s2357_s21 + $0xe0] ss:$8 sps:$4 sm:$0xff]  }
  0x2c   : > { %809 = vmatpush1.bf16.msra.mxu0 %v2077_v10  ;;  %2008 = vmatpush1.bf16.msra.mxu1 %v2077_v10  ;;  %v2166_v8 = vld [vmem:[%s2357_s21 + $0x1e4] ss:$8 sps:$4 sm:$0xff]   ;;  %v2169_v10 = vld [vmem:[%s2357_s21 + $0x1e0] ss:$8 sps:$4 sm:$0xff]   ;;  %v2170_v11 = vld [vmem:[%s2357_s21 + $0xf4] ss:$8 sps:$4 sm:$0xff]  }
  0x2d   : > { %810 = vmatprep.subr.bf16.mxu0 %v2256_v1  ;;  %1999 = vmatprep.subr.bf16.mxu1 %v2256_v1  ;;  %v2172_v12 = vld [vmem:[%s2357_s21 + $0x1f4] ss:$8 sps:$4 sm:$0xff]   ;;  %v2175_v14 = vld [vmem:[%s2357_s21 + $0x1f0] ss:$8 sps:$4 sm:$0xff]   ;;  %s2182_s11 = scalar_lea.vmem %s2181_s10, 8192 }
  0x30   : > { %811 = vmatpush1.bf16.msra.mxu0 %v2078_v13  ;;  %2009 = vmatpush1.bf16.msra.mxu1 %v2078_v13  ;;  %v2174_v13 = vld [vmem:[%s2357_s21 + $0xf0] ss:$8 sps:$4 sm:$0xff]  }
  0x31   : > { %812 = vmatprep.subr.bf16.mxu0 %v2256_v1  ;;  %2000 = vmatprep.subr.bf16.mxu1 %v2256_v1  ;;  %v2156_v1 = vld [vmem:[%s2357_s21 + $0xc0] ss:$8 sps:$4 sm:$0xff]   ;;  %s1744_s21 = sshll.u32 %s240_s14, 8 }
  0x32   : > { %s2494_s26 = scalar_lea.vmem [#allocation2], %s1744_s21 }
  0x33   : > { %s1625_s30 = sshll.u32 %s2494_s26, 4  ;;  %s2743_s30 = int_to_ptr.vmem [resolvable:$true] %s1625_s30 }
  0x34   : > { %813 = vmatpush1.bf16.msra.mxu0 %v792_v16  ;;  %2010 = vmatpush1.bf16.msra.mxu1 %v792_v16  ;;  %s2176_s8 = scalar_lea.vmem %s2743_s30, 4096  ;;  %p2183_p1 = scmp.lt.s32.totalorder %s2743_s30, %s2181_s10 }
  0x35   : > { %p2177_p12 = scmp.ne.s32.totalorder %s2743_s30, %s2176_s8  ;;  %p2184_p2 = scmp.lt.s32.totalorder %s2182_s11, %s2176_s8 }
  0x37   : > { %827 = vmatmul.mubr.bf16.vlgmr.msra.gmra.mrb[0].mxu0 %v2080_v17  ;;  %955 = vmatmul.mubr.bf16.vlgmr.msra.gmra.mrb[0].mxu1 %v2083_v18  ;;  %v2482_v17 = vld [vmem:[%s2804_s3] ss:$0 sm:$0xff]  ;;  %p2178_p13 = pnand %p2177_p12, %p2326_p4  ;;  %p2185_p3 = por %p2184_p2, %p2183_p1 }
  0x38   : > { %1823 = vmatprep.mubr.msk.bf16.mxu0 %vm690_vm0, %v2086_v19  ;;  %1839 = vmatprep.mubr.msk.bf16.mxu1 %vm690_vm0, %v2088_v20 }
  0x39   : > { %p2179_p0 = pneg %p2178_p13 }
  0x3b   : > { %p2186_p5 = pnand %p2185_p3, %p2179_p0 }
  0x3f   : > { %835 = vmatmul.mubr.bf16.gmra.mrb[4].mxu0 %v2090_v21  ;;  %963 = vmatmul.mubr.bf16.gmra.mrb[4].mxu1 %v2091_v22 }
  0x40   : > { %1824 = vmatprep.mubr.msk.bf16.mxu0 %vm690_vm0, %v2092_v23  ;;  %1840 = vmatprep.mubr.msk.bf16.mxu1 %vm690_vm0, %v2094_v24 }
  0x47   : > { %843 = vmatmul.mubr.bf16.gmra.mrb[8].mxu0 %v2096_v25  ;;  %971 = vmatmul.mubr.bf16.gmra.mrb[8].mxu1 %v2097_v26 }
  0x48   : > { %1825 = vmatprep.mubr.msk.bf16.mxu0 %vm690_vm0, %v2098_v27  ;;  %1841 = vmatprep.mubr.msk.bf16.mxu1 %vm690_vm0, %v2100_v28 }
  0x4f   : > { %851 = vmatmul.mubr.bf16.gmra.mrb[12].mxu0 %v2102_v29  ;;  %979 = vmatmul.mubr.bf16.gmra.mrb[12].mxu1 %v2103_v30 }
  0x50   : > { %1826 = vmatprep.mubr.msk.bf16.mxu0 %vm690_vm0, %v2104_v31  ;;  %1842 = vmatprep.mubr.msk.bf16.mxu1 %vm690_vm0, %v2106_v32 }
  0x57   : > { %859 = vmatmul.mubr.bf16.gmra.mrb[16].mxu0 %v2108_v33  ;;  %987 = vmatmul.mubr.bf16.gmra.mrb[16].mxu1 %v2109_v34 }
  0x58   : > { %1827 = vmatprep.mubr.msk.bf16.mxu0 %vm690_vm0, %v2110_v35  ;;  %1843 = vmatprep.mubr.msk.bf16.mxu1 %vm690_vm0, %v2112_v36 }
  0x5f   : > { %867 = vmatmul.mubr.bf16.gmra.mrb[20].mxu0 %v2114_v37  ;;  %995 = vmatmul.mubr.bf16.gmra.mrb[20].mxu1 %v2115_v38 }
  0x60   : > { %1828 = vmatprep.mubr.msk.bf16.mxu0 %vm690_vm0, %v2116_v39  ;;  %1844 = vmatprep.mubr.msk.bf16.mxu1 %vm690_vm0, %v2118_v40 }
  0x67   : > { %875 = vmatmul.mubr.bf16.gmra.mrb[24].mxu0 %v2120_v41  ;;  %1003 = vmatmul.mubr.bf16.gmra.mrb[24].mxu1 %v2121_v42 }
  0x68   : > { %1829 = vmatprep.mubr.msk.bf16.mxu0 %vm690_vm0, %v2122_v43  ;;  %1845 = vmatprep.mubr.msk.bf16.mxu1 %vm690_vm0, %v2124_v44 }
  0x6f   : > { %883 = vmatmul.mubr.bf16.gmra.mrb[28].mxu0 %v2126_v45  ;;  %1011 = vmatmul.mubr.bf16.gmra.mrb[28].mxu1 %v2127_v46 }
  0x70   : > { %1830 = vmatprep.mubr.msk.bf16.mxu0 %vm690_vm0, %v2128_v47  ;;  %1846 = vmatprep.mubr.msk.bf16.mxu1 %vm690_vm0, %v2130_v48 }
  0x77   : > { %891 = vmatmul.mubr.bf16.gmra.mrb[32].mxu0 %v2132_v49  ;;  %1019 = vmatmul.mubr.bf16.gmra.mrb[32].mxu1 %v2133_v50 }
  0x78   : > { %1831 = vmatprep.mubr.msk.bf16.mxu0 %vm690_vm0, %v2134_v51  ;;  %1847 = vmatprep.mubr.msk.bf16.mxu1 %vm690_vm0, %v2136_v52 }
  0x7f   : > { %899 = vmatmul.mubr.bf16.gmra.mrb[36].mxu0 %v2138_v53  ;;  %1027 = vmatmul.mubr.bf16.gmra.mrb[36].mxu1 %v2139_v54 }
  0x80   : > { %1832 = vmatprep.mubr.msk.bf16.mxu0 %vm690_vm0, %v2140_v55  ;;  %1848 = vmatprep.mubr.msk.bf16.mxu1 %vm690_vm0, %v2142_v56 }
  0x87   : > { %907 = vmatmul.mubr.bf16.gmra.mrb[40].mxu0 %v2144_v57  ;;  %1035 = vmatmul.mubr.bf16.gmra.mrb[40].mxu1 %v2145_v58 }
  0x88   : > { %1833 = vmatprep.mubr.msk.bf16.mxu0 %vm690_vm0, %v2146_v59  ;;  %1849 = vmatprep.mubr.msk.bf16.mxu1 %vm690_vm0, %v2148_v60 }
  0x8f   : > { %915 = vmatmul.mubr.bf16.gmra.mrb[44].mxu0 %v2150_v61  ;;  %1043 = vmatmul.mubr.bf16.gmra.mrb[44].mxu1 %v2151_v62 }
  0x90   : > { %1834 = vmatprep.mubr.msk.bf16.mxu0 %vm690_vm0, %v2152_v63  ;;  %1850 = vmatprep.mubr.msk.bf16.mxu1 %vm690_vm0, %v2154_v0 }
  0x97   : > { %923 = vmatmul.mubr.bf16.gmra.mrb[48].mxu0 %v2156_v1  ;;  %1051 = vmatmul.mubr.bf16.gmra.mrb[48].mxu1 %v2157_v2 }
  0x98   : > { %1835 = vmatprep.mubr.msk.bf16.mxu0 %vm690_vm0, %v2158_v3  ;;  %1851 = vmatprep.mubr.msk.bf16.mxu1 %vm690_vm0, %v2160_v4 }
  0x9f   : > { %931 = vmatmul.mubr.bf16.gmra.mrb[52].mxu0 %v2162_v5  ;;  %1059 = vmatmul.mubr.bf16.gmra.mrb[52].mxu1 %v2163_v6 }
  0xa0   : > { %1836 = vmatprep.mubr.msk.bf16.mxu0 %vm690_vm0, %v2164_v7  ;;  %1852 = vmatprep.mubr.msk.bf16.mxu1 %vm690_vm0, %v2166_v8 }
  0xa7   : > { %939 = vmatmul.mubr.bf16.gmra.mrb[56].mxu0 %v2168_v9  ;;  %1067 = vmatmul.mubr.bf16.gmra.mrb[56].mxu1 %v2169_v10 }
  0xa8   : > { %1837 = vmatprep.mubr.msk.bf16.mxu0 %vm690_vm0, %v2170_v11  ;;  %1853 = vmatprep.mubr.msk.bf16.mxu1 %vm690_vm0, %v2172_v12 }
  0xaf   : > { %947 = vmatmul.mubr.bf16.gmra.mrb[60].mxu0 %v2174_v13  ;;  %1075 = vmatmul.mubr.bf16.gmra.mrb[60].mxu1 %v2175_v14 }
 0x10a   : > { %v828_v16 = vpop.f32.mrb[0].mxu0  ;;  %v956_v18 = vpop.f32.mrb[0].mxu1 }
 0x10b   : > { %v1090_v19 = vmul.f32 %v2476_v15, %v828_v16  ;;  %v1122_v20 = vmul.f32 %v2476_v15, %v956_v18  ;;  %v830_v21 = vpop.f32.mrb[1].mxu0  ;;  %v958_v22 = vpop.f32.mrb[1].mxu1 }
 0x10c   : > { %v831_v23 = vpop.f32.mrb[2].mxu0  ;;  %v959_v24 = vpop.f32.mrb[2].mxu1 }
 0x10d   : > { %v1161_v25 = vadd.f32 %v2482_v17, %v1090_v19  ;;  %v1193_v26 = vadd.f32 %v2482_v17, %v1122_v20  ;;  %v1091_v27 = vmul.f32 %v2476_v15, %v831_v23  ;;  %v1123_v28 = vmul.f32 %v2476_v15, %v959_v24  ;;  %v833_v29 = vpop.f32.mrb[3].mxu0  ;;  %v961_v30 = vpop.f32.mrb[3].mxu1 }
 0x10f   : > { %v1225_v31 = vmax.f32 %v1161_v25, 0.0  ;;  %v1257_v32 = vmax.f32 %v1193_v26, 0.0  ;;  %v1162_v33 = vadd.f32 %v2482_v17, %v1091_v27  ;;  %v1194_v34 = vadd.f32 %v2482_v17, %v1123_v28 }
 0x111   : > { %v1926_v35 = vpack.c.bf16 %v1225_v31, %v1225_v31  ;;  %v1958_v36 = vpack.c.bf16 %v1257_v32, %v1257_v32  ;;  %v1226_v37 = vmax.f32 %v1162_v33, 0.0  ;;  %v1258_v38 = vmax.f32 %v1194_v34, 0.0 }
 0x112   : > { %v836_v39 = vpop.f32.mrb[4].mxu0  ;;  %v964_v40 = vpop.f32.mrb[4].mxu1 }
 0x113   : > { %1546 = vst.msk [vmem:[%s2494_s26] sm:$0xf] %vm1545_vm3, %v1926_v35  ;;  %1578 = vst.msk [vmem:[%s2494_s26 + $0x80] sm:$0xf] %vm1545_vm3, %v1958_v36  ;;  %v1927_v41 = vpack.c.bf16 %v1226_v37, %v1226_v37  ;;  %v1959_v42 = vpack.c.bf16 %v1258_v38, %v1258_v38  ;;  %v1092_v43 = vmul.f32 %v2476_v15, %v836_v39  ;;  %v838_v45 = vpop.f32.mrb[5].mxu0  ;;  %v966_v46 = vpop.f32.mrb[5].mxu1 }
 0x114   : > { %v1124_v44 = vmul.f32 %v2476_v15, %v964_v40  ;;  %v839_v47 = vpop.f32.mrb[6].mxu0  ;;  %v967_v48 = vpop.f32.mrb[6].mxu1 }
 0x115   : > { %1547 = vst.msk [vmem:[%s2494_s26 + $0x4] sm:$0xf] %vm1545_vm3, %v1927_v41  ;;  %1579 = vst.msk [vmem:[%s2494_s26 + $0x84] sm:$0xf] %vm1545_vm3, %v1959_v42  ;;  %v1163_v49 = vadd.f32 %v2482_v17, %v1092_v43  ;;  %v1093_v51 = vmul.f32 %v2476_v15, %v839_v47  ;;  %v1125_v52 = vmul.f32 %v2476_v15, %v967_v48  ;;  %v841_v53 = vpop.f32.mrb[7].mxu0  ;;  %v969_v54 = vpop.f32.mrb[7].mxu1 }
 0x116   : > { %v1195_v50 = vadd.f32 %v2482_v17, %v1124_v44 }
 0x117   : > { %v1227_v55 = vmax.f32 %v1163_v49, 0.0  ;;  %v1164_v57 = vadd.f32 %v2482_v17, %v1093_v51  ;;  %v1196_v58 = vadd.f32 %v2482_v17, %v1125_v52 }
 0x118   : > { %v1259_v56 = vmax.f32 %v1195_v50, 0.0 }
 0x119   : > { %v1928_v59 = vpack.c.bf16 %v1227_v55, %v1227_v55  ;;  %v1228_v61 = vmax.f32 %v1164_v57, 0.0  ;;  %v1260_v62 = vmax.f32 %v1196_v58, 0.0 }
 0x11a   : > { %v1960_v60 = vpack.c.bf16 %v1259_v56, %v1259_v56  ;;  %v844_v63 = vpop.f32.mrb[8].mxu0  ;;  %v972_v0 = vpop.f32.mrb[8].mxu1 }
 0x11b   : > { %1548 = vst.msk [vmem:[%s2494_s26 + $0x8] sm:$0xf] %vm1545_vm3, %v1928_v59  ;;  %v1929_v1 = vpack.c.bf16 %v1228_v61, %v1228_v61  ;;  %v1961_v2 = vpack.c.bf16 %v1260_v62, %v1260_v62  ;;  %v1094_v3 = vmul.f32 %v2476_v15, %v844_v63  ;;  %v1126_v4 = vmul.f32 %v2476_v15, %v972_v0  ;;  %v846_v5 = vpop.f32.mrb[9].mxu0  ;;  %v974_v6 = vpop.f32.mrb[9].mxu1 }
 0x11c   : > { %1580 = vst.msk [vmem:[%s2494_s26 + $0x88] sm:$0xf] %vm1545_vm3, %v1960_v60  ;;  %v847_v7 = vpop.f32.mrb[10].mxu0  ;;  %v975_v8 = vpop.f32.mrb[10].mxu1 }
 0x11d   : > { %1549 = vst.msk [vmem:[%s2494_s26 + $0xc] sm:$0xf] %vm1545_vm3, %v1929_v1  ;;  %1581 = vst.msk [vmem:[%s2494_s26 + $0x8c] sm:$0xf] %vm1545_vm3, %v1961_v2  ;;  %v1165_v9 = vadd.f32 %v2482_v17, %v1094_v3  ;;  %v1197_v10 = vadd.f32 %v2482_v17, %v1126_v4  ;;  %v1095_v11 = vmul.f32 %v2476_v15, %v847_v7  ;;  %v849_v13 = vpop.f32.mrb[11].mxu0  ;;  %v977_v14 = vpop.f32.mrb[11].mxu1 }
 0x11e   : > { %v1127_v12 = vmul.f32 %v2476_v15, %v975_v8 }
 0x11f   : > { %v1229_v16 = vmax.f32 %v1165_v9, 0.0  ;;  %v1261_v18 = vmax.f32 %v1197_v10, 0.0  ;;  %v1166_v19 = vadd.f32 %v2482_v17, %v1095_v11 }
 0x120   : > { %v1198_v20 = vadd.f32 %v2482_v17, %v1127_v12 }
 0x121   : > { %v1930_v21 = vpack.c.bf16 %v1229_v16, %v1229_v16  ;;  %v1962_v22 = vpack.c.bf16 %v1261_v18, %v1261_v18  ;;  %v1230_v23 = vmax.f32 %v1166_v19, 0.0 }
 0x122   : > { %v1262_v24 = vmax.f32 %v1198_v20, 0.0  ;;  %v852_v25 = vpop.f32.mrb[12].mxu0  ;;  %v980_v26 = vpop.f32.mrb[12].mxu1 }
 0x123   : > { %1550 = vst.msk [vmem:[%s2494_s26 + $0x10] sm:$0xf] %vm1545_vm3, %v1930_v21  ;;  %1582 = vst.msk [vmem:[%s2494_s26 + $0x90] sm:$0xf] %vm1545_vm3, %v1962_v22  ;;  %v1931_v27 = vpack.c.bf16 %v1230_v23, %v1230_v23  ;;  %v1096_v29 = vmul.f32 %v2476_v15, %v852_v25  ;;  %v1128_v30 = vmul.f32 %v2476_v15, %v980_v26  ;;  %v854_v31 = vpop.f32.mrb[13].mxu0  ;;  %v982_v32 = vpop.f32.mrb[13].mxu1 }
 0x124   : > { %v1963_v28 = vpack.c.bf16 %v1262_v24, %v1262_v24  ;;  %v855_v33 = vpop.f32.mrb[14].mxu0  ;;  %v983_v34 = vpop.f32.mrb[14].mxu1 }
 0x125   : > { %1551 = vst.msk [vmem:[%s2494_s26 + $0x14] sm:$0xf] %vm1545_vm3, %v1931_v27  ;;  %v1167_v35 = vadd.f32 %v2482_v17, %v1096_v29  ;;  %v1199_v36 = vadd.f32 %v2482_v17, %v1128_v30  ;;  %v1097_v37 = vmul.f32 %v2476_v15, %v855_v33  ;;  %v1129_v38 = vmul.f32 %v2476_v15, %v983_v34  ;;  %v857_v39 = vpop.f32.mrb[15].mxu0  ;;  %v985_v40 = vpop.f32.mrb[15].mxu1 }
 0x126   : > { %1583 = vst.msk [vmem:[%s2494_s26 + $0x94] sm:$0xf] %vm1545_vm3, %v1963_v28 }
 0x127   : > { %v1231_v41 = vmax.f32 %v1167_v35, 0.0  ;;  %v1263_v42 = vmax.f32 %v1199_v36, 0.0  ;;  %v1168_v43 = vadd.f32 %v2482_v17, %v1097_v37  ;;  %v1200_v44 = vadd.f32 %v2482_v17, %v1129_v38 }
 0x129   : > { %v1932_v45 = vpack.c.bf16 %v1231_v41, %v1231_v41  ;;  %v1964_v46 = vpack.c.bf16 %v1263_v42, %v1263_v42  ;;  %v1232_v47 = vmax.f32 %v1168_v43, 0.0  ;;  %v1264_v48 = vmax.f32 %v1200_v44, 0.0 }
 0x12a   : > { %v860_v49 = vpop.f32.mrb[16].mxu0  ;;  %v988_v50 = vpop.f32.mrb[16].mxu1 }
 0x12b   : > { %1552 = vst.msk [vmem:[%s2494_s26 + $0x18] sm:$0xf] %vm1545_vm3, %v1932_v45  ;;  %1584 = vst.msk [vmem:[%s2494_s26 + $0x98] sm:$0xf] %vm1545_vm3, %v1964_v46  ;;  %v1933_v51 = vpack.c.bf16 %v1232_v47, %v1232_v47  ;;  %v1965_v52 = vpack.c.bf16 %v1264_v48, %v1264_v48  ;;  %v1098_v53 = vmul.f32 %v2476_v15, %v860_v49  ;;  %v862_v55 = vpop.f32.mrb[17].mxu0  ;;  %v990_v56 = vpop.f32.mrb[17].mxu1 }
 0x12c   : > { %v1130_v54 = vmul.f32 %v2476_v15, %v988_v50  ;;  %v863_v57 = vpop.f32.mrb[18].mxu0  ;;  %v991_v58 = vpop.f32.mrb[18].mxu1 }
 0x12d   : > { %1553 = vst.msk [vmem:[%s2494_s26 + $0x1c] sm:$0xf] %vm1545_vm3, %v1933_v51  ;;  %1585 = vst.msk [vmem:[%s2494_s26 + $0x9c] sm:$0xf] %vm1545_vm3, %v1965_v52  ;;  %v1169_v59 = vadd.f32 %v2482_v17, %v1098_v53  ;;  %v1099_v61 = vmul.f32 %v2476_v15, %v863_v57  ;;  %v1131_v62 = vmul.f32 %v2476_v15, %v991_v58  ;;  %v865_v63 = vpop.f32.mrb[19].mxu0  ;;  %v993_v0 = vpop.f32.mrb[19].mxu1 }
 0x12e   : > { %v1201_v60 = vadd.f32 %v2482_v17, %v1130_v54 }
 0x12f   : > { %v1233_v1 = vmax.f32 %v1169_v59, 0.0  ;;  %v1170_v3 = vadd.f32 %v2482_v17, %v1099_v61  ;;  %v1202_v4 = vadd.f32 %v2482_v17, %v1131_v62 }
 0x130   : > { %v1265_v2 = vmax.f32 %v1201_v60, 0.0 }
 0x131   : > { %v1934_v5 = vpack.c.bf16 %v1233_v1, %v1233_v1  ;;  %v1234_v7 = vmax.f32 %v1170_v3, 0.0  ;;  %v1266_v8 = vmax.f32 %v1202_v4, 0.0 }
 0x132   : > { %v1966_v6 = vpack.c.bf16 %v1265_v2, %v1265_v2  ;;  %v868_v9 = vpop.f32.mrb[20].mxu0  ;;  %v996_v10 = vpop.f32.mrb[20].mxu1 }
 0x133   : > { %1554 = vst.msk [vmem:[%s2494_s26 + $0x20] sm:$0xf] %vm1545_vm3, %v1934_v5  ;;  %v1935_v11 = vpack.c.bf16 %v1234_v7, %v1234_v7  ;;  %v1967_v12 = vpack.c.bf16 %v1266_v8, %v1266_v8  ;;  %v1100_v13 = vmul.f32 %v2476_v15, %v868_v9  ;;  %v1132_v14 = vmul.f32 %v2476_v15, %v996_v10  ;;  %v870_v16 = vpop.f32.mrb[21].mxu0  ;;  %v998_v18 = vpop.f32.mrb[21].mxu1 }
 0x134   : > { %1586 = vst.msk [vmem:[%s2494_s26 + $0xa0] sm:$0xf] %vm1545_vm3, %v1966_v6  ;;  %v871_v19 = vpop.f32.mrb[22].mxu0  ;;  %v999_v20 = vpop.f32.mrb[22].mxu1 }
 0x135   : > { %1555 = vst.msk [vmem:[%s2494_s26 + $0x24] sm:$0xf] %vm1545_vm3, %v1935_v11  ;;  %1587 = vst.msk [vmem:[%s2494_s26 + $0xa4] sm:$0xf] %vm1545_vm3, %v1967_v12  ;;  %v1171_v21 = vadd.f32 %v2482_v17, %v1100_v13  ;;  %v1203_v22 = vadd.f32 %v2482_v17, %v1132_v14  ;;  %v1101_v23 = vmul.f32 %v2476_v15, %v871_v19  ;;  %v873_v25 = vpop.f32.mrb[23].mxu0  ;;  %v1001_v26 = vpop.f32.mrb[23].mxu1 }
 0x136   : > { %v1133_v24 = vmul.f32 %v2476_v15, %v999_v20 }
 0x137   : > { %v1235_v27 = vmax.f32 %v1171_v21, 0.0  ;;  %v1267_v28 = vmax.f32 %v1203_v22, 0.0  ;;  %v1172_v29 = vadd.f32 %v2482_v17, %v1101_v23 }
 0x138   : > { %v1204_v30 = vadd.f32 %v2482_v17, %v1133_v24 }
 0x139   : > { %v1936_v31 = vpack.c.bf16 %v1235_v27, %v1235_v27  ;;  %v1968_v32 = vpack.c.bf16 %v1267_v28, %v1267_v28  ;;  %v1236_v33 = vmax.f32 %v1172_v29, 0.0 }
 0x13a   : > { %v1268_v34 = vmax.f32 %v1204_v30, 0.0  ;;  %v876_v35 = vpop.f32.mrb[24].mxu0  ;;  %v1004_v36 = vpop.f32.mrb[24].mxu1 }
 0x13b   : > { %1556 = vst.msk [vmem:[%s2494_s26 + $0x28] sm:$0xf] %vm1545_vm3, %v1936_v31  ;;  %1588 = vst.msk [vmem:[%s2494_s26 + $0xa8] sm:$0xf] %vm1545_vm3, %v1968_v32  ;;  %v1937_v37 = vpack.c.bf16 %v1236_v33, %v1236_v33  ;;  %v1102_v39 = vmul.f32 %v2476_v15, %v876_v35  ;;  %v1134_v40 = vmul.f32 %v2476_v15, %v1004_v36  ;;  %v878_v41 = vpop.f32.mrb[25].mxu0  ;;  %v1006_v42 = vpop.f32.mrb[25].mxu1 }
 0x13c   : > { %v1969_v38 = vpack.c.bf16 %v1268_v34, %v1268_v34  ;;  %v879_v43 = vpop.f32.mrb[26].mxu0  ;;  %v1007_v44 = vpop.f32.mrb[26].mxu1 }
 0x13d   : > { %1557 = vst.msk [vmem:[%s2494_s26 + $0x2c] sm:$0xf] %vm1545_vm3, %v1937_v37  ;;  %v1173_v45 = vadd.f32 %v2482_v17, %v1102_v39  ;;  %v1205_v46 = vadd.f32 %v2482_v17, %v1134_v40  ;;  %v1103_v47 = vmul.f32 %v2476_v15, %v879_v43  ;;  %v1135_v48 = vmul.f32 %v2476_v15, %v1007_v44  ;;  %v881_v49 = vpop.f32.mrb[27].mxu0  ;;  %v1009_v50 = vpop.f32.mrb[27].mxu1 }
 0x13e   : > { %1589 = vst.msk [vmem:[%s2494_s26 + $0xac] sm:$0xf] %vm1545_vm3, %v1969_v38 }
 0x13f   : > { %v1237_v51 = vmax.f32 %v1173_v45, 0.0  ;;  %v1269_v52 = vmax.f32 %v1205_v46, 0.0  ;;  %v1174_v53 = vadd.f32 %v2482_v17, %v1103_v47  ;;  %v1206_v54 = vadd.f32 %v2482_v17, %v1135_v48 }
 0x141   : > { %v1938_v55 = vpack.c.bf16 %v1237_v51, %v1237_v51  ;;  %v1970_v56 = vpack.c.bf16 %v1269_v52, %v1269_v52  ;;  %v1238_v57 = vmax.f32 %v1174_v53, 0.0  ;;  %v1270_v58 = vmax.f32 %v1206_v54, 0.0 }
 0x142   : > { %v884_v59 = vpop.f32.mrb[28].mxu0  ;;  %v1012_v60 = vpop.f32.mrb[28].mxu1 }
 0x143   : > { %1558 = vst.msk [vmem:[%s2494_s26 + $0x30] sm:$0xf] %vm1545_vm3, %v1938_v55  ;;  %1590 = vst.msk [vmem:[%s2494_s26 + $0xb0] sm:$0xf] %vm1545_vm3, %v1970_v56  ;;  %v1939_v61 = vpack.c.bf16 %v1238_v57, %v1238_v57  ;;  %v1971_v62 = vpack.c.bf16 %v1270_v58, %v1270_v58  ;;  %v1104_v63 = vmul.f32 %v2476_v15, %v884_v59  ;;  %v886_v1 = vpop.f32.mrb[29].mxu0  ;;  %v1014_v2 = vpop.f32.mrb[29].mxu1 }
 0x144   : > { %v1136_v0 = vmul.f32 %v2476_v15, %v1012_v60  ;;  %v887_v3 = vpop.f32.mrb[30].mxu0  ;;  %v1015_v4 = vpop.f32.mrb[30].mxu1 }
 0x145   : > { %1559 = vst.msk [vmem:[%s2494_s26 + $0x34] sm:$0xf] %vm1545_vm3, %v1939_v61  ;;  %1591 = vst.msk [vmem:[%s2494_s26 + $0xb4] sm:$0xf] %vm1545_vm3, %v1971_v62  ;;  %v1175_v5 = vadd.f32 %v2482_v17, %v1104_v63  ;;  %v1105_v7 = vmul.f32 %v2476_v15, %v887_v3  ;;  %v1137_v8 = vmul.f32 %v2476_v15, %v1015_v4  ;;  %v889_v9 = vpop.f32.mrb[31].mxu0  ;;  %v1017_v10 = vpop.f32.mrb[31].mxu1 }
 0x146   : > { %v1207_v6 = vadd.f32 %v2482_v17, %v1136_v0 }
 0x147   : > { %v1239_v11 = vmax.f32 %v1175_v5, 0.0  ;;  %v1176_v13 = vadd.f32 %v2482_v17, %v1105_v7  ;;  %v1208_v14 = vadd.f32 %v2482_v17, %v1137_v8 }
 0x148   : > { %v1271_v12 = vmax.f32 %v1207_v6, 0.0 }
 0x149   : > { %v1940_v16 = vpack.c.bf16 %v1239_v11, %v1239_v11  ;;  %v1240_v19 = vmax.f32 %v1176_v13, 0.0  ;;  %v1272_v20 = vmax.f32 %v1208_v14, 0.0 }
 0x14a   : > { %v1972_v18 = vpack.c.bf16 %v1271_v12, %v1271_v12  ;;  %v892_v21 = vpop.f32.mrb[32].mxu0  ;;  %v1020_v22 = vpop.f32.mrb[32].mxu1 }
 0x14b   : > { %1560 = vst.msk [vmem:[%s2494_s26 + $0x38] sm:$0xf] %vm1545_vm3, %v1940_v16  ;;  %v1941_v23 = vpack.c.bf16 %v1240_v19, %v1240_v19  ;;  %v1973_v24 = vpack.c.bf16 %v1272_v20, %v1272_v20  ;;  %v1106_v25 = vmul.f32 %v2476_v15, %v892_v21  ;;  %v1138_v26 = vmul.f32 %v2476_v15, %v1020_v22  ;;  %v894_v27 = vpop.f32.mrb[33].mxu0  ;;  %v1022_v28 = vpop.f32.mrb[33].mxu1 }
 0x14c   : > { %1592 = vst.msk [vmem:[%s2494_s26 + $0xb8] sm:$0xf] %vm1545_vm3, %v1972_v18  ;;  %v895_v29 = vpop.f32.mrb[34].mxu0  ;;  %v1023_v30 = vpop.f32.mrb[34].mxu1 }
 0x14d   : > { %1561 = vst.msk [vmem:[%s2494_s26 + $0x3c] sm:$0xf] %vm1545_vm3, %v1941_v23  ;;  %1593 = vst.msk [vmem:[%s2494_s26 + $0xbc] sm:$0xf] %vm1545_vm3, %v1973_v24  ;;  %v1177_v31 = vadd.f32 %v2482_v17, %v1106_v25  ;;  %v1209_v32 = vadd.f32 %v2482_v17, %v1138_v26  ;;  %v1107_v33 = vmul.f32 %v2476_v15, %v895_v29  ;;  %v897_v35 = vpop.f32.mrb[35].mxu0  ;;  %v1025_v36 = vpop.f32.mrb[35].mxu1 }
 0x14e   : > { %v1139_v34 = vmul.f32 %v2476_v15, %v1023_v30 }
 0x14f   : > { %v1241_v37 = vmax.f32 %v1177_v31, 0.0  ;;  %v1273_v38 = vmax.f32 %v1209_v32, 0.0  ;;  %v1178_v39 = vadd.f32 %v2482_v17, %v1107_v33 }
 0x150   : > { %v1210_v40 = vadd.f32 %v2482_v17, %v1139_v34 }
 0x151   : > { %v1942_v41 = vpack.c.bf16 %v1241_v37, %v1241_v37  ;;  %v1974_v42 = vpack.c.bf16 %v1273_v38, %v1273_v38  ;;  %v1242_v43 = vmax.f32 %v1178_v39, 0.0 }
 0x152   : > { %v1274_v44 = vmax.f32 %v1210_v40, 0.0  ;;  %v900_v45 = vpop.f32.mrb[36].mxu0  ;;  %v1028_v46 = vpop.f32.mrb[36].mxu1 }
 0x153   : > { %1562 = vst.msk [vmem:[%s2494_s26 + $0x40] sm:$0xf] %vm1545_vm3, %v1942_v41  ;;  %1594 = vst.msk [vmem:[%s2494_s26 + $0xc0] sm:$0xf] %vm1545_vm3, %v1974_v42  ;;  %v1943_v47 = vpack.c.bf16 %v1242_v43, %v1242_v43  ;;  %v1108_v49 = vmul.f32 %v2476_v15, %v900_v45  ;;  %v1140_v50 = vmul.f32 %v2476_v15, %v1028_v46  ;;  %v902_v51 = vpop.f32.mrb[37].mxu0  ;;  %v1030_v52 = vpop.f32.mrb[37].mxu1 }
 0x154   : > { %v1975_v48 = vpack.c.bf16 %v1274_v44, %v1274_v44  ;;  %v903_v53 = vpop.f32.mrb[38].mxu0  ;;  %v1031_v54 = vpop.f32.mrb[38].mxu1 }
 0x155   : > { %1563 = vst.msk [vmem:[%s2494_s26 + $0x44] sm:$0xf] %vm1545_vm3, %v1943_v47  ;;  %v1179_v55 = vadd.f32 %v2482_v17, %v1108_v49  ;;  %v1211_v56 = vadd.f32 %v2482_v17, %v1140_v50  ;;  %v1109_v57 = vmul.f32 %v2476_v15, %v903_v53  ;;  %v1141_v58 = vmul.f32 %v2476_v15, %v1031_v54  ;;  %v905_v59 = vpop.f32.mrb[39].mxu0  ;;  %v1033_v60 = vpop.f32.mrb[39].mxu1 }
 0x156   : > { %1595 = vst.msk [vmem:[%s2494_s26 + $0xc4] sm:$0xf] %vm1545_vm3, %v1975_v48 }
 0x157   : > { %v1243_v61 = vmax.f32 %v1179_v55, 0.0  ;;  %v1275_v62 = vmax.f32 %v1211_v56, 0.0  ;;  %v1180_v63 = vadd.f32 %v2482_v17, %v1109_v57  ;;  %v1212_v0 = vadd.f32 %v2482_v17, %v1141_v58 }
 0x159   : > { %v1944_v1 = vpack.c.bf16 %v1243_v61, %v1243_v61  ;;  %v1976_v2 = vpack.c.bf16 %v1275_v62, %v1275_v62  ;;  %v1244_v3 = vmax.f32 %v1180_v63, 0.0  ;;  %v1276_v4 = vmax.f32 %v1212_v0, 0.0 }
 0x15a   : > { %v908_v5 = vpop.f32.mrb[40].mxu0  ;;  %v1036_v6 = vpop.f32.mrb[40].mxu1 }
 0x15b   : > { %1564 = vst.msk [vmem:[%s2494_s26 + $0x48] sm:$0xf] %vm1545_vm3, %v1944_v1  ;;  %1596 = vst.msk [vmem:[%s2494_s26 + $0xc8] sm:$0xf] %vm1545_vm3, %v1976_v2  ;;  %v1945_v7 = vpack.c.bf16 %v1244_v3, %v1244_v3  ;;  %v1977_v8 = vpack.c.bf16 %v1276_v4, %v1276_v4  ;;  %v1110_v9 = vmul.f32 %v2476_v15, %v908_v5  ;;  %v910_v11 = vpop.f32.mrb[41].mxu0  ;;  %v1038_v12 = vpop.f32.mrb[41].mxu1 }
 0x15c   : > { %v1142_v10 = vmul.f32 %v2476_v15, %v1036_v6  ;;  %v911_v13 = vpop.f32.mrb[42].mxu0  ;;  %v1039_v14 = vpop.f32.mrb[42].mxu1 }
 0x15d   : > { %1565 = vst.msk [vmem:[%s2494_s26 + $0x4c] sm:$0xf] %vm1545_vm3, %v1945_v7  ;;  %1597 = vst.msk [vmem:[%s2494_s26 + $0xcc] sm:$0xf] %vm1545_vm3, %v1977_v8  ;;  %v1181_v16 = vadd.f32 %v2482_v17, %v1110_v9  ;;  %v1111_v19 = vmul.f32 %v2476_v15, %v911_v13  ;;  %v1143_v20 = vmul.f32 %v2476_v15, %v1039_v14  ;;  %v913_v21 = vpop.f32.mrb[43].mxu0  ;;  %v1041_v22 = vpop.f32.mrb[43].mxu1 }
 0x15e   : > { %v1213_v18 = vadd.f32 %v2482_v17, %v1142_v10 }
 0x15f   : > { %v1245_v23 = vmax.f32 %v1181_v16, 0.0  ;;  %v1182_v25 = vadd.f32 %v2482_v17, %v1111_v19  ;;  %v1214_v26 = vadd.f32 %v2482_v17, %v1143_v20 }
 0x160   : > { %v1277_v24 = vmax.f32 %v1213_v18, 0.0 }
 0x161   : > { %v1946_v27 = vpack.c.bf16 %v1245_v23, %v1245_v23  ;;  %v1246_v29 = vmax.f32 %v1182_v25, 0.0  ;;  %v1278_v30 = vmax.f32 %v1214_v26, 0.0 }
 0x162   : > { %v1978_v28 = vpack.c.bf16 %v1277_v24, %v1277_v24  ;;  %v916_v31 = vpop.f32.mrb[44].mxu0  ;;  %v1044_v32 = vpop.f32.mrb[44].mxu1 }
 0x163   : > { %1566 = vst.msk [vmem:[%s2494_s26 + $0x50] sm:$0xf] %vm1545_vm3, %v1946_v27  ;;  %v1947_v33 = vpack.c.bf16 %v1246_v29, %v1246_v29  ;;  %v1979_v34 = vpack.c.bf16 %v1278_v30, %v1278_v30  ;;  %v1112_v35 = vmul.f32 %v2476_v15, %v916_v31  ;;  %v1144_v36 = vmul.f32 %v2476_v15, %v1044_v32  ;;  %v918_v37 = vpop.f32.mrb[45].mxu0  ;;  %v1046_v38 = vpop.f32.mrb[45].mxu1 }
 0x164   : > { %1598 = vst.msk [vmem:[%s2494_s26 + $0xd0] sm:$0xf] %vm1545_vm3, %v1978_v28  ;;  %v919_v39 = vpop.f32.mrb[46].mxu0  ;;  %v1047_v40 = vpop.f32.mrb[46].mxu1 }
 0x165   : > { %1567 = vst.msk [vmem:[%s2494_s26 + $0x54] sm:$0xf] %vm1545_vm3, %v1947_v33  ;;  %1599 = vst.msk [vmem:[%s2494_s26 + $0xd4] sm:$0xf] %vm1545_vm3, %v1979_v34  ;;  %v1183_v41 = vadd.f32 %v2482_v17, %v1112_v35  ;;  %v1215_v42 = vadd.f32 %v2482_v17, %v1144_v36  ;;  %v1113_v43 = vmul.f32 %v2476_v15, %v919_v39  ;;  %v921_v45 = vpop.f32.mrb[47].mxu0  ;;  %v1049_v46 = vpop.f32.mrb[47].mxu1 }
 0x166   : > { %v1145_v44 = vmul.f32 %v2476_v15, %v1047_v40 }
 0x167   : > { %v1247_v47 = vmax.f32 %v1183_v41, 0.0  ;;  %v1279_v48 = vmax.f32 %v1215_v42, 0.0  ;;  %v1184_v49 = vadd.f32 %v2482_v17, %v1113_v43 }
 0x168   : > { %v1216_v50 = vadd.f32 %v2482_v17, %v1145_v44 }
 0x169   : > { %v1948_v51 = vpack.c.bf16 %v1247_v47, %v1247_v47  ;;  %v1980_v52 = vpack.c.bf16 %v1279_v48, %v1279_v48  ;;  %v1248_v53 = vmax.f32 %v1184_v49, 0.0 }
 0x16a   : > { %v1280_v54 = vmax.f32 %v1216_v50, 0.0  ;;  %v924_v55 = vpop.f32.mrb[48].mxu0  ;;  %v1052_v56 = vpop.f32.mrb[48].mxu1 }
 0x16b   : > { %1568 = vst.msk [vmem:[%s2494_s26 + $0x58] sm:$0xf] %vm1545_vm3, %v1948_v51  ;;  %1600 = vst.msk [vmem:[%s2494_s26 + $0xd8] sm:$0xf] %vm1545_vm3, %v1980_v52  ;;  %v1949_v57 = vpack.c.bf16 %v1248_v53, %v1248_v53  ;;  %v1114_v59 = vmul.f32 %v2476_v15, %v924_v55  ;;  %v1146_v60 = vmul.f32 %v2476_v15, %v1052_v56  ;;  %v926_v61 = vpop.f32.mrb[49].mxu0  ;;  %v1054_v62 = vpop.f32.mrb[49].mxu1 }
 0x16c   : > { %v1981_v58 = vpack.c.bf16 %v1280_v54, %v1280_v54  ;;  %v927_v63 = vpop.f32.mrb[50].mxu0  ;;  %v1055_v0 = vpop.f32.mrb[50].mxu1 }
 0x16d   : > { %1569 = vst.msk [vmem:[%s2494_s26 + $0x5c] sm:$0xf] %vm1545_vm3, %v1949_v57  ;;  %v1185_v1 = vadd.f32 %v2482_v17, %v1114_v59  ;;  %v1217_v2 = vadd.f32 %v2482_v17, %v1146_v60  ;;  %v1115_v3 = vmul.f32 %v2476_v15, %v927_v63  ;;  %v1147_v4 = vmul.f32 %v2476_v15, %v1055_v0  ;;  %v929_v5 = vpop.f32.mrb[51].mxu0  ;;  %v1057_v6 = vpop.f32.mrb[51].mxu1 }
 0x16e   : > { %1601 = vst.msk [vmem:[%s2494_s26 + $0xdc] sm:$0xf] %vm1545_vm3, %v1981_v58 }
 0x16f   : > { %v1249_v7 = vmax.f32 %v1185_v1, 0.0  ;;  %v1281_v8 = vmax.f32 %v1217_v2, 0.0  ;;  %v1186_v9 = vadd.f32 %v2482_v17, %v1115_v3  ;;  %v1218_v10 = vadd.f32 %v2482_v17, %v1147_v4 }
 0x171   : > { %v1950_v11 = vpack.c.bf16 %v1249_v7, %v1249_v7  ;;  %v1982_v12 = vpack.c.bf16 %v1281_v8, %v1281_v8  ;;  %v1250_v13 = vmax.f32 %v1186_v9, 0.0  ;;  %v1282_v14 = vmax.f32 %v1218_v10, 0.0 }
 0x172   : > { %v932_v16 = vpop.f32.mrb[52].mxu0  ;;  %v1060_v18 = vpop.f32.mrb[52].mxu1 }
 0x173   : > { %1570 = vst.msk [vmem:[%s2494_s26 + $0x60] sm:$0xf] %vm1545_vm3, %v1950_v11  ;;  %1602 = vst.msk [vmem:[%s2494_s26 + $0xe0] sm:$0xf] %vm1545_vm3, %v1982_v12  ;;  %v1951_v19 = vpack.c.bf16 %v1250_v13, %v1250_v13  ;;  %v1983_v20 = vpack.c.bf16 %v1282_v14, %v1282_v14  ;;  %v1116_v21 = vmul.f32 %v2476_v15, %v932_v16  ;;  %v934_v23 = vpop.f32.mrb[53].mxu0  ;;  %v1062_v24 = vpop.f32.mrb[53].mxu1 }
 0x174   : > { %v1148_v22 = vmul.f32 %v2476_v15, %v1060_v18  ;;  %v935_v25 = vpop.f32.mrb[54].mxu0  ;;  %v1063_v26 = vpop.f32.mrb[54].mxu1 }
 0x175   : > { %1571 = vst.msk [vmem:[%s2494_s26 + $0x64] sm:$0xf] %vm1545_vm3, %v1951_v19  ;;  %1603 = vst.msk [vmem:[%s2494_s26 + $0xe4] sm:$0xf] %vm1545_vm3, %v1983_v20  ;;  %v1187_v27 = vadd.f32 %v2482_v17, %v1116_v21  ;;  %v1117_v29 = vmul.f32 %v2476_v15, %v935_v25  ;;  %v1149_v30 = vmul.f32 %v2476_v15, %v1063_v26  ;;  %v937_v31 = vpop.f32.mrb[55].mxu0  ;;  %v1065_v32 = vpop.f32.mrb[55].mxu1 }
 0x176   : > { %v1219_v28 = vadd.f32 %v2482_v17, %v1148_v22 }
 0x177   : > { %v1251_v33 = vmax.f32 %v1187_v27, 0.0  ;;  %v1188_v35 = vadd.f32 %v2482_v17, %v1117_v29  ;;  %v1220_v36 = vadd.f32 %v2482_v17, %v1149_v30 }
 0x178   : > { %v1283_v34 = vmax.f32 %v1219_v28, 0.0 }
 0x179   : > { %v1952_v37 = vpack.c.bf16 %v1251_v33, %v1251_v33  ;;  %v1252_v39 = vmax.f32 %v1188_v35, 0.0  ;;  %v1284_v40 = vmax.f32 %v1220_v36, 0.0 }
 0x17a   : > { %v1984_v38 = vpack.c.bf16 %v1283_v34, %v1283_v34  ;;  %v940_v41 = vpop.f32.mrb[56].mxu0  ;;  %v1068_v42 = vpop.f32.mrb[56].mxu1 }
 0x17b   : > { %1572 = vst.msk [vmem:[%s2494_s26 + $0x68] sm:$0xf] %vm1545_vm3, %v1952_v37  ;;  %v1953_v43 = vpack.c.bf16 %v1252_v39, %v1252_v39  ;;  %v1985_v44 = vpack.c.bf16 %v1284_v40, %v1284_v40  ;;  %v1118_v45 = vmul.f32 %v2476_v15, %v940_v41  ;;  %v1150_v46 = vmul.f32 %v2476_v15, %v1068_v42  ;;  %v942_v47 = vpop.f32.mrb[57].mxu0  ;;  %v1070_v48 = vpop.f32.mrb[57].mxu1 }
 0x17c   : > { %1604 = vst.msk [vmem:[%s2494_s26 + $0xe8] sm:$0xf] %vm1545_vm3, %v1984_v38  ;;  %v943_v49 = vpop.f32.mrb[58].mxu0  ;;  %v1071_v50 = vpop.f32.mrb[58].mxu1 }
 0x17d   : > { %1573 = vst.msk [vmem:[%s2494_s26 + $0x6c] sm:$0xf] %vm1545_vm3, %v1953_v43  ;;  %1605 = vst.msk [vmem:[%s2494_s26 + $0xec] sm:$0xf] %vm1545_vm3, %v1985_v44  ;;  %v1189_v51 = vadd.f32 %v2482_v17, %v1118_v45  ;;  %v1221_v52 = vadd.f32 %v2482_v17, %v1150_v46  ;;  %v1119_v53 = vmul.f32 %v2476_v15, %v943_v49  ;;  %v945_v55 = vpop.f32.mrb[59].mxu0  ;;  %v1073_v56 = vpop.f32.mrb[59].mxu1 }
 0x17e   : > { %v1151_v54 = vmul.f32 %v2476_v15, %v1071_v50 }
 0x17f   : > { %v1253_v57 = vmax.f32 %v1189_v51, 0.0  ;;  %v1285_v58 = vmax.f32 %v1221_v52, 0.0  ;;  %v1190_v59 = vadd.f32 %v2482_v17, %v1119_v53 }
 0x180   : > { %v1222_v60 = vadd.f32 %v2482_v17, %v1151_v54 }
 0x181   : > { %v1954_v61 = vpack.c.bf16 %v1253_v57, %v1253_v57  ;;  %v1986_v62 = vpack.c.bf16 %v1285_v58, %v1285_v58  ;;  %v1254_v63 = vmax.f32 %v1190_v59, 0.0 }
 0x182   : > { %v1286_v0 = vmax.f32 %v1222_v60, 0.0  ;;  %v948_v1 = vpop.f32.mrb[60].mxu0  ;;  %v1076_v2 = vpop.f32.mrb[60].mxu1 }
 0x183   : > { %1574 = vst.msk [vmem:[%s2494_s26 + $0x70] sm:$0xf] %vm1545_vm3, %v1954_v61  ;;  %1606 = vst.msk [vmem:[%s2494_s26 + $0xf0] sm:$0xf] %vm1545_vm3, %v1986_v62  ;;  %v1955_v3 = vpack.c.bf16 %v1254_v63, %v1254_v63  ;;  %v1120_v5 = vmul.f32 %v2476_v15, %v948_v1  ;;  %v1152_v6 = vmul.f32 %v2476_v15, %v1076_v2  ;;  %v950_v7 = vpop.f32.mrb[61].mxu0  ;;  %v1078_v8 = vpop.f32.mrb[61].mxu1 }
 0x184   : > { %v1987_v4 = vpack.c.bf16 %v1286_v0, %v1286_v0  ;;  %v951_v9 = vpop.f32.mrb[62].mxu0  ;;  %v1079_v10 = vpop.f32.mrb[62].mxu1 }
 0x185   : > { %1575 = vst.msk [vmem:[%s2494_s26 + $0x74] sm:$0xf] %vm1545_vm3, %v1955_v3  ;;  %v1191_v11 = vadd.f32 %v2482_v17, %v1120_v5  ;;  %v1223_v12 = vadd.f32 %v2482_v17, %v1152_v6  ;;  %v1121_v13 = vmul.f32 %v2476_v15, %v951_v9  ;;  %v1153_v14 = vmul.f32 %v2476_v15, %v1079_v10  ;;  %v953_v16 = vpop.f32.mrb[63].mxu0  ;;  %v1081_v18 = vpop.f32.mrb[63].mxu1 }
 0x186   : > { %1607 = vst.msk [vmem:[%s2494_s26 + $0xf4] sm:$0xf] %vm1545_vm3, %v1987_v4 }
 0x187   : > { %v1255_v19 = vmax.f32 %v1191_v11, 0.0  ;;  %v1287_v20 = vmax.f32 %v1223_v12, 0.0  ;;  %v1192_v21 = vadd.f32 %v2482_v17, %v1121_v13  ;;  %v1224_v22 = vadd.f32 %v2482_v17, %v1153_v14 }
 0x189   : > { %v1956_v23 = vpack.c.bf16 %v1255_v19, %v1255_v19  ;;  %v1988_v24 = vpack.c.bf16 %v1287_v20, %v1287_v20  ;;  %v1256_v25 = vmax.f32 %v1192_v21, 0.0  ;;  %v1288_v26 = vmax.f32 %v1224_v22, 0.0 }
 0x18b   : > { %1576 = vst.msk [vmem:[%s2494_s26 + $0x78] sm:$0xf] %vm1545_vm3, %v1956_v23  ;;  %1608 = vst.msk [vmem:[%s2494_s26 + $0xf8] sm:$0xf] %vm1545_vm3, %v1988_v24  ;;  %v1957_v15 = vpack.c.bf16 %v1256_v25, %v1256_v25  ;;  %v1989_v17 = vpack.c.bf16 %v1288_v26, %v1288_v26 }
 0x18d   : > { %1577 = vst.msk [vmem:[%s2494_s26 + $0x7c] sm:$0xf] %vm1545_vm3, %v1957_v15  ;;  %1609 = vst.msk [vmem:[%s2494_s26 + $0xfc] sm:$0xf] %vm1545_vm3, %v1989_v17 }
 0x18e   : > { %2189 = shalt.err (!%p2186_p5)
}
 0x18f   : > { %s2190_s12 = scalar_lea.hbm %s2741_s7, 4096  ;;  %s2194_s22 = scalar_lea.hbm %s2805_s4, 200704 }
 0x190   : > { %p2191_p6 = scmp.ne.s32.totalorder %s2741_s7, %s2190_s12  ;;  %p2195_p10 = scmp.lt.u32.totalorder %s2741_s7, %s2805_s4 }
 0x191   : > { %p2196_p11 = scmp.lt.u32.totalorder %s2194_s22, %s2190_s12  ;;  %p2198_p13 = scmp.lt.u32.totalorder %s2190_s12, %s2741_s7 }
 0x192   : > { %p2192_p7 = pnand %p2191_p6, %p2326_p4 }
 0x193   : > { %p2197_p12 = por %p2196_p11, %p2195_p10 }
 0x194   : > { %p2193_p9 = pneg %p2192_p7 }
 0x195   : > { %p2199_p0 = por %p2198_p13, %p2197_p12 }
 0x197   : > { %p2200_p1 = pnand %p2199_p0, %p2193_p9 }
 0x199   : > { %2203 = shalt.err (!%p2200_p1)
}
 0x19a   : > { %s2259_s26 = smov 64   ;;  %s2260_s29 = smov 4  }
 0x19b   : > { %2011 = dma.vmem_to_hbm [thread:$0]  (%p2326_p4), %s2743_s30, 4096, %s2741_s7, %s2755_s18, %s2259_s26, %s2259_s26, %s2260_s29  }
 0x19c PF: > { %p2017_p2 = scmp.ge.s32.totalorder %s2254_s20, 2  ;;  %s1640_s5 = sand.u32 1, %s2234_s15  }
 0x19d   : > { %s1641_s6 = scalar_lea.sflag [#allocation3], %s1640_s5 }
 0x19e   : > { %p2014_p3 = pnand %p2017_p2, %p2333_p8 }
 0x1a0   : > { %2229 = dma.done.wait (!%p2014_p3), %s1641_s6, 4096  }
 0x1a1   : > { %2231 = vsyncadd (!%p2014_p3), %s1641_s6, 4294963200  ;;  %s17_s20 = sadd.s32 1, %s2254_s20   ;;  %s2808_s15 = smov %s2238_s16 }
 0x1a2   : > { %p14_p5 = scmp.ge.s32.totalorder %s17_s20, 51   ;;  %s2809_s16 = smov %s2242_s17 }
 0x1a3   : > { %s2810_s17 = smov %s2339_s28  ;;  %s2811_s18 = smov %s2250_s19 }
 0x1a4   : > { %s2812_s19 = smov %s2814_s23  ;;  %16 = sbr.rel (!%p14_p5) target bundleno = 4 (0x4), region = 80 }
 0x1ab   :  { %1646 = vsyncpa [#allocation3], 1 }
 0x1ac   :  { %1648 = vsyncpa [#allocation3 + $0x1], 1 }

</bundles_post_ra>
